<compile_context>
chip_gen: v7x
topology: tpu7x:2x2x1
jax: 0.10.0
libtpu: 0.0.40
codegen_flags: <defaults>
</compile_context>

<pallas_src>
import math
import numbers
import functools

import numpy as np
import jax
import jax.numpy as jnp
from jax import lax
from jax.experimental import pallas as pl
from jax.experimental.pallas import tpu as pltpu


def _gaussian_weights_1d(kernel_size, sigma, dim=2):
    """Per-axis 1-D Gaussian taps as Python floats (compile-time constants).

    Mirrors the PyTorch module's construction exactly (including the unusual
    exp(-((x - mean) / (2 * std)) ** 2) term).  Because the 2-D kernel is a product of
    per-axis factors, normalizing each 1-D factor separately is mathematically identical
    to the module's global normalization of the 2-D kernel (intentional, not a bug).
    """
    ks = [kernel_size] * dim if isinstance(kernel_size, numbers.Number) else list(kernel_size)
    sg = [sigma] * dim if isinstance(sigma, numbers.Number) else list(sigma)
    taps = []
    for size, std in zip(ks, sg):
        mean = (size - 1) / 2.0
        xs = np.arange(size, dtype=np.float64)
        g = (1.0 / (std * math.sqrt(2.0 * math.pi))) * np.exp(-(((xs - mean) / (2.0 * std)) ** 2))
        g = g / g.sum()
        taps.append(tuple(float(v) for v in g))
    return taps


def _gauss2d_separable_kernel(x_ref, o_ref, *, w0, w1, Ho, Wo):
    # x_ref: VMEM (Bnc, H, W) tile in the input dtype — fused (n*c) slabs, rows, cols
    # o_ref: VMEM (Bnc, Ho, Wo)
    # w0/w1: Python-float taps (compile-time immediates), len K0 / K1
    xt = x_ref[...].astype(jnp.float32)            # single cast of the resident tile

    # Vertical (H / sublane) pass first: K0 shifted FMAs -> (Bnc, Ho, W).
    tmp = w0[0] * xt[:, 0:Ho, :]
    for i in range(1, len(w0)):
        tmp = tmp + w0[i] * xt[:, i:i + Ho, :]

    # Horizontal (W / lane) pass on the reduced array: K1 shifted FMAs -> (Bnc, Ho, Wo).
    acc = w1[0] * tmp[:, :, 0:Wo]
    for j in range(1, len(w1)):
        acc = acc + w1[j] * tmp[:, :, j:j + Wo]

    o_ref[...] = acc.astype(o_ref.dtype)


def _vmem_capacity_bytes():
    """Per-core VMEM capacity; conservative 64 MiB (v7x) fallback if the query fails."""
    try:
        info = pltpu.get_tpu_info()
        cap = getattr(info, "vmem_capacity_bytes", None)
        if cap:
            return int(cap)
    except Exception:
        pass
    return 64 * 1024 * 1024


def gaussian_smoothing_2d(x, sigma, kernel_size=3, block_nc=None):
    """x: (N, C, H, W); depthwise Gaussian blur with 'valid' padding.
    Returns (N, C, H - K0 + 1, W - K1 + 1) in x.dtype."""
    # TODO(synk): dim=1 and dim=3 variants of the module are not implemented here.
    N, C, H, W = x.shape
    w0, w1 = _gaussian_weights_1d(kernel_size, sigma, dim=2)
    K0, K1 = len(w0), len(w1)
    Ho, Wo = H - K0 + 1, W - K1 + 1
    NC = N * C
    itemsize = np.dtype(x.dtype).itemsize

    # Free layout: merge the leading (N, C) dims — no HBM transpose, no data movement.
    x_r = x.reshape(NC, H, W)

    # Generation-aware VMEM budget (v5e/v6e: 128 MiB, v7x: 64 MiB per TC).
    vmem_cap = _vmem_capacity_bytes()
    vmem_limit = max(32 * 1024 * 1024, min(int(vmem_cap * 0.75), 96 * 1024 * 1024))

    if block_nc is None:
        # Per-(n,c)-slice bytes: double-buffered I/O blocks in the *input dtype* plus an
        # estimate of the in-kernel f32 intermediates (xt, shifted copies, accumulators).
        per_slice_io = 2 * (H * W + Ho * Wo) * itemsize
        per_slice_f32 = 4 * (4 * H * W)
        per_slice = per_slice_io + per_slice_f32
        budget = vmem_limit // 2                       # headroom for pipeline/spill scratch
        block_nc = max(1, min(NC, budget // per_slice))
        # Keep >= 2 grid steps (v7x has 2 TensorCores; also enables DMA/compute overlap),
        # preferring ~4 steps when NC allows.
        if NC >= 2:
            block_nc = min(block_nc, pl.cdiv(NC, min(NC, 4)))
        block_nc = max(1, block_nc)

    grid = (pl.cdiv(NC, block_nc),)

    kernel_fn = functools.partial(_gauss2d_separable_kernel, w0=w0, w1=w1, Ho=Ho, Wo=Wo)

    cost = pl.CostEstimate(
        flops=2 * (K0 + K1) * Ho * Wo * NC,
        transcendentals=0,
        bytes_accessed=NC * (H * W + Ho * Wo) * itemsize,
    )

    out_r = pl.pallas_call(
        kernel_fn,
        out_shape=jax.ShapeDtypeStruct((NC, Ho, Wo), x.dtype),
        grid=grid,
        in_specs=[pl.BlockSpec((block_nc, H, W), lambda g: (g, 0, 0))],
        out_specs=pl.BlockSpec((block_nc, Ho, Wo), lambda g: (g, 0, 0)),
        compiler_params=pltpu.CompilerParams(
            dimension_semantics=("parallel",),
            vmem_limit_bytes=vmem_limit,
        ),
        cost_estimate=cost,
    )(x_r)

    # Free layout: split the leading fused dim back into (N, C).
    return out_r.reshape(N, C, Ho, Wo)


# ----------------------------- pure-JAX reference (spec-faithful) -----------------------------
def _make_gaussian_weight_2d(kernel_size, sigma, dim=2):
    """Reproduces the PyTorch module's 2-D kernel construction in float32."""
    ks = [kernel_size] * dim if isinstance(kernel_size, numbers.Number) else list(kernel_size)
    sg = [sigma] * dim if isinstance(sigma, numbers.Number) else list(sigma)
    grids = jnp.meshgrid(*[jnp.arange(s, dtype=jnp.float32) for s in ks], indexing="ij")
    kernel = jnp.ones((), dtype=jnp.float32)
    for size, std, mgrid in zip(ks, sg, grids):
        mean = (size - 1) / 2.0
        kernel = kernel * (
            1.0 / (std * math.sqrt(2.0 * math.pi))
            * jnp.exp(-(((mgrid - mean) / (2.0 * std)) ** 2))
        )
    return kernel / jnp.sum(kernel)


def _reference(x, sigma, kernel_size=3):
    """Depthwise (grouped) conv2d, valid padding, NCHW — mirrors F.conv2d(groups=C)."""
    N, C, H, W = x.shape
    w = _make_gaussian_weight_2d(kernel_size, sigma, dim=2)
    wk = jnp.broadcast_to(w[None, None, :, :], (C, 1, w.shape[0], w.shape[1]))
    return lax.conv_general_dilated(
        x.astype(jnp.float32),
        wk.astype(jnp.float32),
        window_strides=(1, 1),
        padding="VALID",
        feature_group_count=C,
        dimension_numbers=("NCHW", "OIHW", "NCHW"),
    ).astype(x.dtype)


if __name__ == "__main__":
    key = jax.random.PRNGKey(0)
    N, C, H, W = 2, 4, 16, 16
    kernel_size = 3
    sigma = 1.5

    x = jax.random.normal(key, (N, C, H, W), dtype=jnp.float32)

    out = gaussian_smoothing_2d(x, sigma, kernel_size=kernel_size)
    out = jax.block_until_ready(out)

    ref = jax.block_until_ready(_reference(x, sigma, kernel_size=kernel_size))
    assert out.shape == (N, C, H - kernel_size + 1, W - kernel_size + 1), out.shape
    err = float(jnp.max(jnp.abs(out.astype(jnp.float32) - ref.astype(jnp.float32))))
    assert err < 1e-5, err

    print("KERNEL_OK")
</pallas_src>

<mosaic_0001>
module attributes {stable_mosaic.version = 11 : i64} {
  func.func @_gauss2d_separable_kernel(%arg0: i32, %arg1: memref<2x16x16xf32, #tpu.memory_space<vmem>>, %arg2: memref<2x14x14xf32, #tpu.memory_space<vmem>>) attributes {dimension_semantics = [#tpu.dimension_semantics<parallel>], iteration_bounds = array<i64: 4>, scalar_prefetch = 0 : i64, scratch_operands = 0 : i64, tpu.core_type = #tpu.core_type<tc>, window_params = [{transform_indices = @transform_0, window_bounds = array<i64: 2, 16, 16>}, {transform_indices = @transform_1, window_bounds = array<i64: 2, 14, 14>}]} {
    %c0 = arith.constant 0 : index
    %c0_0 = arith.constant 0 : index
    %c0_1 = arith.constant 0 : index
    %0 = vector.load %arg1[%c0, %c0_0, %c0_1] : memref<2x16x16xf32, #tpu.memory_space<vmem>>, vector<2x16x16xf32>
    %1 = vector.extract_strided_slice %0 {offsets = [0, 0, 0], sizes = [2, 14, 16], strides = [1, 1, 1]} : vector<2x16x16xf32> to vector<2x14x16xf32>
    %cst = arith.constant 0.320767879 : f32
    %2 = vector.broadcast %cst : f32 to vector<2x14x16xf32>
    %3 = arith.mulf %2, %1 : vector<2x14x16xf32>
    %4 = vector.extract_strided_slice %0 {offsets = [0, 1, 0], sizes = [2, 14, 16], strides = [1, 1, 1]} : vector<2x16x16xf32> to vector<2x14x16xf32>
    %cst_2 = arith.constant 0.358464241 : f32
    %5 = vector.broadcast %cst_2 : f32 to vector<2x14x16xf32>
    %6 = arith.mulf %5, %4 : vector<2x14x16xf32>
    %7 = arith.addf %3, %6 : vector<2x14x16xf32>
    %8 = vector.extract_strided_slice %0 {offsets = [0, 2, 0], sizes = [2, 14, 16], strides = [1, 1, 1]} : vector<2x16x16xf32> to vector<2x14x16xf32>
    %cst_3 = arith.constant 0.320767879 : f32
    %9 = vector.broadcast %cst_3 : f32 to vector<2x14x16xf32>
    %10 = arith.mulf %9, %8 : vector<2x14x16xf32>
    %11 = arith.addf %7, %10 : vector<2x14x16xf32>
    %12 = vector.extract_strided_slice %11 {offsets = [0, 0, 0], sizes = [2, 14, 14], strides = [1, 1, 1]} : vector<2x14x16xf32> to vector<2x14x14xf32>
    %cst_4 = arith.constant 0.320767879 : f32
    %13 = vector.broadcast %cst_4 : f32 to vector<2x14x14xf32>
    %14 = arith.mulf %13, %12 : vector<2x14x14xf32>
    %15 = vector.extract_strided_slice %11 {offsets = [0, 0, 1], sizes = [2, 14, 14], strides = [1, 1, 1]} : vector<2x14x16xf32> to vector<2x14x14xf32>
    %cst_5 = arith.constant 0.358464241 : f32
    %16 = vector.broadcast %cst_5 : f32 to vector<2x14x14xf32>
    %17 = arith.mulf %16, %15 : vector<2x14x14xf32>
    %18 = arith.addf %14, %17 : vector<2x14x14xf32>
    %19 = vector.extract_strided_slice %11 {offsets = [0, 0, 2], sizes = [2, 14, 14], strides = [1, 1, 1]} : vector<2x14x16xf32> to vector<2x14x14xf32>
    %cst_6 = arith.constant 0.320767879 : f32
    %20 = vector.broadcast %cst_6 : f32 to vector<2x14x14xf32>
    %21 = arith.mulf %20, %19 : vector<2x14x14xf32>
    %22 = arith.addf %18, %21 : vector<2x14x14xf32>
    %c0_7 = arith.constant 0 : index
    %c0_8 = arith.constant 0 : index
    %c0_9 = arith.constant 0 : index
    %23 = vector.load %arg2[%c0_7, %c0_8, %c0_9] : memref<2x14x14xf32, #tpu.memory_space<vmem>>, vector<2x14x14xf32>
    tpu.vector_store %arg2[%c0_7, %c0_8, %c0_9], %22 {strides = array<i32>} : memref<2x14x14xf32, #tpu.memory_space<vmem>>, vector<2x14x14xf32>,
    return
  }
  func.func @transform_0(%arg0: i32) -> (i32, i32, i32) {
    %c0_i32 = arith.constant 0 : i32
    %c0_i32_0 = arith.constant 0 : i32
    %c0_i32_1 = arith.constant 0 : i32
    return %arg0, %c0_i32, %c0_i32_0 : i32, i32, i32
  }
  func.func @transform_1(%arg0: i32) -> (i32, i32, i32) {
    %c0_i32 = arith.constant 0 : i32
    %c0_i32_0 = arith.constant 0 : i32
    %c0_i32_1 = arith.constant 0 : i32
    return %arg0, %c0_i32, %c0_i32_0 : i32, i32, i32
  }
}

</mosaic_0001>

<bundles_post_ra>
// kernel: tpu_custom_call.1
= control target key start
LH: loop header
LB: loop body
LE: loop exit
PB: predicated region body
PF: predicated region fallthrough
CT: control target
= control target key end

     0   :  { %6 = vsyncpa [#allocation3], 0  ;;  %s570_s0 = inlined_call_operand.hbm [shape: f32[8,16,16], index: 0, kind: input, shape index: {}]   ;;  %s571_s1 = inlined_call_operand.vmem [shape: f32[8,14,14], index: 1, kind: output, shape index: {}]  }
   0x1   :  { %8 = vsyncpa [#allocation3 + $0x1], 0  ;;  %s457_s6 = smov 0   ;;  %s459_s7 = smov 0  }
   0x2   :  { %s461_s8 = smov 0   ;;  %s463_s9 = smov 0  }
   0x3 LB: > { %s315_s10 = sadd.s32 4294967295, %s440_s9   ;;  %s477_s11 = sadd.s32 1, %s440_s9   ;;  %s440_s9 = sphi %s463_s9, %s578_s9   ;;  %s436_s8 = sphi %s461_s8, %s577_s8   ;;  %s432_s7 = sphi %s459_s7, %s576_s7   ;;  %s428_s6 = sphi %s457_s6, %s575_s6  }
   0x4   : > { %s18_s12 = ssub.s32 %s440_s9, %s477_s11  ;;  %s21_s13 = sadd.s32 1, %s436_s8 }
   0x5   : > { %p19_p0 = scmp.eq.s32.totalorder %s18_s12, 0  ;;  %p28_p1 = scmp.ne.s32.totalorder %s436_s8, %s432_s7 }
   0x6   : > { %p29_p2 = scmp.eq.s32.totalorder %s440_s9, 0  ;;  %p34_p3 = scmp.ne.s32.totalorder %s432_s7, %s428_s6 }
   0x7   : > { %s487_s14 = scalar_select %p19_p0, %s436_s8, %s21_s13  }
   0x8   : > { %p30_p4 = por %p29_p2, %p28_p1  ;;  %p35_p5 = scmp.eq.s32.totalorder %s315_s10, 0 }
   0x9   : > { %p339_p6 = scmp.lt.s32.totalorder %s440_s9, 4  ;;  %s84_s16 = sand.u32 1, %s436_s8  }
   0xa   : > { %p492_p7 = por %p35_p5, %p34_p3  ;;  %s319_s17 = sshll.u32 %s84_s16, 5 }
   0xb   : > { %s331_s18 = sshll.u32 %s440_s9, 9  ;;  %s88_s22 = scalar_lea.vmem [#allocation2], %s319_s17 }
   0xc   : > { %s501_s21 = scalar_lea.hbm %s570_s0, %s331_s18  ;;  %s96_s23 = sshll.u32 %s88_s22, 4  ;;  %s503_s23 = int_to_ptr.vmem [resolvable:$true] %s96_s23 }
   0xd   : > { %p505_p8 = pnand %p339_p6, %p30_p4  ;;  %s510_s25 = scalar_lea.sflag [#allocation3], %s84_s16 }
   0xe   : > { %s376_s26 = scalar_lea.hbm %s501_s21, 512  ;;  %s381_s29 = scalar_lea.hbm %s570_s0, 2048 }
   0xf   : > { %p377_p10 = scmp.ne.s32.totalorder %s501_s21, %s376_s26  ;;  %p378_p11 = pneg %p505_p8 }
  0x10   : > { %p382_p0 = scmp.lt.u32.totalorder %s501_s21, %s570_s0  ;;  %p383_p1 = scmp.lt.u32.totalorder %s381_s29, %s376_s26 }
  0x11   : > { %p379_p12 = pnand %p378_p11, %p377_p10  ;;  %p385_p3 = scmp.lt.u32.totalorder %s376_s26, %s501_s21 }
  0x12   : > { %p384_p2 = por %p383_p1, %p382_p0 }
  0x13   : > { %p380_p13 = pneg %p379_p12 }
  0x14   : > { %p386_p4 = por %p385_p3, %p384_p2 }
  0x16   : > { %p387_p5 = pnand %p386_p4, %p380_p13 }
  0x18   : > { %390 = shalt.err (!%p387_p5)
}
  0x19   : > { %s391_s3 = scalar_lea.vmem %s503_s23, 512  ;;  %s442_s4 = smov [#allocation2]  }
  0x1a   : > { %p392_p6 = scmp.ne.s32.totalorder %s503_s23, %s391_s3  ;;  %s396_s5 = sshll.u32 %s442_s4, 4  ;;  %s397_s5 = int_to_ptr.vmem [resolvable:$false] %s396_s5 }
  0x1b   : > { %s398_s6 = scalar_lea.vmem %s397_s5, 1024  ;;  %p399_p9 = scmp.lt.s32.totalorder %s503_s23, %s397_s5 }
  0x1c   : > { %p394_p10 = pnand %p392_p6, %p378_p11  ;;  %p400_p0 = scmp.lt.s32.totalorder %s398_s6, %s391_s3 }
  0x1e   : > { %p395_p12 = pneg %p394_p10  ;;  %p401_p1 = por %p400_p0, %p399_p9 }
  0x20   : > { %p402_p2 = pnand %p401_p1, %p395_p12 }
  0x22   : > { %405 = shalt.err (!%p402_p2)
}
  0x23   : > { %s443_s12 = smov 128   ;;  %s444_s13 = smov 8  }
  0x24   : > { %338 = dma.hbm_to_vmem [thread:$0]  (!%p505_p8), %s501_s21, 512, %s503_s23, %s510_s25, %s443_s12, %s443_s12, %s444_s13  }
  0x25   : > { %p104_p11 = scmp.lt.s32.totalorder %s440_s9, 5  ;;  %p574_p13 = scmp.ge.s32.totalorder %s440_s9, 1 }
  0x27   : > { %p105_p3 = pnand %p574_p13, %p104_p11 }
  0x28   : > { %s110_s16 = sand.u32 (!%p105_p3), 1, %s432_s7  }
  0x29   : > { %108 = sbr.rel (%p105_p3) target bundleno = 191 (0xbf), region = 24  ;;  %s324_s17 = sshll.u32 (!%p105_p3), %s110_s16, 5 }
  0x2a   : > { %s111_s18 = scalar_lea.sflag (!%p105_p3), [#allocation3], %s110_s16  ;;  %s114_s19 = scalar_lea.vmem (!%p105_p3), [#allocation2], %s324_s17 }
  0x30   : > { %423 = dma.done.wait (%p492_p7), %s111_s18, 512  }
  0x31   : > { %425 = vsyncadd (%p492_p7), %s111_s18, 4294966784  ;;  %v145_v0 = vld [vmem:[%s114_s19 + $0x18] sm:$0xff]  ;;  %v143_v1 = vld [vmem:[%s114_s19 + $0x8] sm:$0xff]  ;;  %vm158_vm0 = vcmask 1046528   ;;  %vm177_vm1 = vcmask 1045504   ;;  %s445_s15 = smov 127  }
  0x32   : > { %v142_v2 = vld [vmem:[%s114_s19] sm:$0xff]  ;;  %v149_v3 = vmul.f32 0.32076788, %v145_v0  ;;  %v153_v4 = vmul.f32 0.35846424, %v145_v0  ;;  %v144_v12 = vld [vmem:[%s114_s19 + $0x10] sm:$0xff] }
  0x33   : > { %v147_v5 = vmul.f32 0.32076788, %v143_v1  ;;  %v151_v6 = vmul.f32 0.35846424, %v143_v1  ;;  %v146_v7 = vmul.f32 0.32076788, %v142_v2 }
  0x34   : > { %v150_v8 = vmul.f32 0.35846424, %v142_v2  ;;  %v163_v9 = vrot.slane %v153_v4, 1  ;;  %v182_v10 = vrot.slane %v149_v3, 2  ;;  %v148_v16 = vmul.f32 0.32076788, %v144_v12 }
  0x35   : > { %v179_v11 = vrot.slane %v147_v5, 2  ;;  %v160_v13 = vrot.slane %v151_v6, 1  ;;  %v178_v15 = vrot.slane %v146_v7, 2  ;;  %v152_v18 = vmul.f32 0.35846424, %v144_v12  ;;  %s446_s20 = smov 126  }
  0x36   : > { %v159_v14 = vrot.slane %v150_v8, 1  ;;  %v172_v17 = vadd.f32 %v163_v9, %v149_v3  ;;  %v181_v22 = vrot.slane %v148_v16, 2  ;;  %s325_s21 = sshll.u32 %s315_s10, 1  ;;  %vm242_vm2 = vcmask 111616  }
  0x37   : > { %v170_v19 = vadd.f32 %v160_v13, %v147_v5  ;;  %v180_v21 = vsel %vm177_vm1, %v178_v15, %v179_v11  ;;  %v162_v25 = vrot.slane %v152_v18, 1  ;;  %p136_p7 = scmp.lt.s32.totalorder %s325_s21, 7  ;;  %vm240_vm3 = vcmask 113664  }
  0x38   : > { %v161_v20 = vsel %vm158_vm0, %v159_v14, %v160_v13  ;;  %v191_v23 = vadd.f32 %v182_v10, %v172_v17  ;;  %v183_v30 = vsel %vm177_vm1, %v181_v22, %v182_v10 }
  0x39   : > { %v169_v24 = vadd.f32 %v161_v20, %v146_v7  ;;  %v189_v26 = vadd.f32 %v179_v11, %v170_v19  ;;  %v164_v29 = vsel %vm158_vm0, %v162_v25, %v163_v9  ;;  %s580_s21 = smov (!%p136_p7, %s325_s21), 7 }
  0x3a   : > { %v199_v27 = vmul.f32 0.35846424, %v191_v23  ;;  %v171_v32 = vadd.f32 %v164_v29, %v148_v16  ;;  %v195_v38 = vmul.f32 0.32076788, %v191_v23  ;;  %s332_s22 = sshll.u32 %s580_s21, 4 }
  0x3b   : > { %v188_v28 = vadd.f32 %v180_v21, %v169_v24  ;;  %v197_v31 = vmul.f32 0.35846424, %v189_v26  ;;  %v193_v33 = vmul.f32 0.32076788, %v189_v26  ;;  %s140_s25 = scalar_lea.vmem %s571_s1, %s332_s22 }
  0x3c   : > { %210 = vrot.lane.b32.xlu1 %v199_v27, %s445_s15  ;;  %v190_v35 = vadd.f32 %v183_v30, %v171_v32 }
  0x3d   : > { %206 = vrot.lane.b32.xlu0 %v197_v31, %s445_s15  ;;  %v196_v34 = vmul.f32 0.35846424, %v188_v28  ;;  %v192_v37 = vmul.f32 0.32076788, %v188_v28 }
  0x3e   : > { %v198_v36 = vmul.f32 0.35846424, %v190_v35  ;;  %v194_v39 = vmul.f32 0.32076788, %v190_v35 }
  0x40   : > { %226 = vrot.lane.b32.xlu1 %v193_v33, %s446_s20 }
  0x41   : > { %204 = vrot.lane.b32.xlu0 %v196_v34, %s445_s15 }
  0x44   : > { %208 = vrot.lane.b32.xlu1 %v198_v36, %s445_s15 }
  0x45   : > { %224 = vrot.lane.b32.xlu0 %v192_v37, %s446_s20 }
  0x48   : > { %230 = vrot.lane.b32.xlu1 %v195_v38, %s446_s20 }
  0x49   : > { %228 = vrot.lane.b32.xlu0 %v194_v39, %s446_s20 }
  0xae   : > { %v211_v40 = vpop.permute.xlu1 %210 }
  0xaf   : > { %v207_v41 = vpop.permute.xlu0 %206  ;;  %v219_v50 = vadd.f32 %v211_v40, %v195_v38 }
  0xb0   : > { %v217_v42 = vadd.f32 %v207_v41, %v193_v33 }
  0xb2   : > { %v227_v43 = vpop.permute.xlu1 %226 }
  0xb3   : > { %v237_v44 = vadd.f32 %v227_v43, %v217_v42  ;;  %v205_v45 = vpop.permute.xlu0 %204 }
  0xb4   : > { %v216_v46 = vadd.f32 %v205_v45, %v192_v37 }
  0xb5   : > { %243 = vst.msk [vmem:[%s140_s25 + $0x8] sm:$0x3f] %vm242_vm2, %v237_v44 }
  0xb6   : > { %v209_v47 = vpop.permute.xlu1 %208 }
  0xb7   : > { %v225_v48 = vpop.permute.xlu0 %224  ;;  %v218_v51 = vadd.f32 %v209_v47, %v194_v39 }
  0xb8   : > { %v236_v49 = vadd.f32 %v225_v48, %v216_v46 }
  0xba   : > { %241 = vst.msk [vmem:[%s140_s25] sm:$0xff] %vm240_vm3, %v236_v49  ;;  %v231_v52 = vpop.permute.xlu1 %230 }
  0xbb   : > { %v239_v53 = vadd.f32 %v231_v52, %v219_v50  ;;  %v229_v54 = vpop.permute.xlu0 %228 }
  0xbc   : > { %v238_v55 = vadd.f32 %v229_v54, %v218_v51 }
  0xbd   : > { %245 = vst.msk [vmem:[%s140_s25 + $0x18] sm:$0x3f] %vm242_vm2, %v239_v53 }
  0xbe   : > { %244 = vst.msk [vmem:[%s140_s25 + $0x10] sm:$0xff] %vm240_vm3, %v238_v55 }
  0xbf PF: > { %p11_p8 = scmp.ge.s32.totalorder %s477_s11, 6   ;;  %s575_s6 = smov %s432_s7 }
  0xc0   : > { %s576_s7 = smov %s436_s8  ;;  %s577_s8 = smov %s487_s14 }
  0xc1   : > { %s578_s9 = smov %s477_s11  ;;  %13 = sbr.rel (!%p11_p8) target bundleno = 3 (0x3), region = 64 }
  0xc8   :  { %270 = vsyncpa [#allocation3], 1 }
  0xc9   :  { %272 = vsyncpa [#allocation3 + $0x1], 1 }

</bundles_post_ra>
